<compile_context>
chip_gen: v7x
topology: tpu7x:2x2x1
jax: 0.10.0
libtpu: 0.0.40
codegen_flags: <defaults>
</compile_context>

<pallas_src>
import functools

import jax
import jax.numpy as jnp
from jax.experimental import pallas as pl
from jax.experimental.pallas import tpu as pltpu


# ----------------------------------------------------------------------------
# Kernel: one batch-block -> scores -> softmax -> context.
# ----------------------------------------------------------------------------
def attention_kernel(enc_ref, v_ref, ctx_ref, w_ref):
    """
    enc_ref : [bb, T, H]  encoder outputs (compute dtype, e.g. bf16) - streamed
    v_ref   : [1, 1, H]   f32 collapsed score vector v = W_att_enc @ w_align^T
    ctx_ref : [bb, 1, H]  f32 context
    w_ref   : [bb, T]     f32 attention weights (T on the lane axis)
    """
    enc = enc_ref[...]                                        # [bb, T, H]

    # scores[b, t] = <enc[b, t, :], v>.
    # Exact collapse of align(attention([enc ; h])): the decoder-hidden and
    # bias contributions are per-row constants and cancel under softmax.
    scores = jnp.sum(enc.astype(jnp.float32) * v_ref[...], axis=-1)   # [bb, T]

    # Softmax over the sequence axis (last / lane axis); divide on the EUP.
    m = jnp.max(scores, axis=-1, keepdims=True)
    e = jnp.exp(scores - m)
    denom = jnp.sum(e, axis=-1, keepdims=True)
    w = e * pl.reciprocal(denom, approx=True)                 # [bb, T] f32

    # context[b, 0, h] = sum_t w[b, t] * enc[b, t, h]
    # Batched contraction over T on the MXU (bf16 operands, f32 accumulate).
    ctx = jnp.einsum("bqt,bth->bqh",
                     w[:, None, :].astype(enc.dtype), enc,
                     preferred_element_type=jnp.float32)      # [bb, 1, H]
    ctx_ref[...] = ctx.astype(ctx_ref.dtype)
    w_ref[...] = w.astype(w_ref.dtype)


# ----------------------------------------------------------------------------
# Wrapper: batch-tiled, double-buffered pipeline over encoder_outputs.
# ----------------------------------------------------------------------------
def _pick_block_b(B, T, H, itemsize):
    """Batch rows per grid step.

    Keep one enc block <= ~4 MiB so the double-buffered pipeline fits v5e's
    16 MiB scoped-VMEM default (v6e / v7x have more headroom).  For B > 8 use
    a multiple of 8 so the 2-D output blocks satisfy the (8, 128) tiling rule;
    a partial final block is handled by Pallas masking.
    """
    if B <= 8:
        return B
    row_bytes = max(1, T * H * itemsize)
    fit = (4 * 1024 * 1024) // row_bytes
    return int(max(8, min(64, (fit // 8) * 8)))


@functools.partial(jax.jit, static_argnames=("compute_dtype", "block_b"))
def attention_forward(params, decoder_hidden, encoder_outputs,
                      *, compute_dtype=jnp.bfloat16, block_b=None):
    B, T, H = encoder_outputs.shape
    # NOTE: decoder_hidden (and W_att_hid / b_att / b_align) provably do not
    # affect either output of this module (no tanh between the Linears +
    # softmax shift invariance), so they are not sent to the kernel.
    del decoder_hidden

    # Tiny O(H^2) precompute at high precision: v = W_att_enc @ w_align^T.
    v = jnp.dot(params["w_att_enc"].astype(jnp.float32),
                params["w_align"].astype(jnp.float32).T,
                precision=jax.lax.Precision.HIGHEST).reshape(1, 1, H)

    # bf16 stream for the dominant byte stream (enc); f32 math inside.
    enc = encoder_outputs.astype(compute_dtype)

    if block_b is None:
        block_b = _pick_block_b(B, T, H, jnp.dtype(compute_dtype).itemsize)
    grid = (pl.cdiv(B, block_b),)

    ctx, w = pl.pallas_call(
        attention_kernel,
        out_shape=(jax.ShapeDtypeStruct((B, 1, H), jnp.float32),
                   jax.ShapeDtypeStruct((B, T), jnp.float32)),
        grid=grid,
        in_specs=[
            pl.BlockSpec((block_b, T, H), lambda i: (i, 0, 0)),  # streamed
            pl.BlockSpec((1, 1, H), lambda i: (0, 0, 0)),        # resident
        ],
        out_specs=(
            pl.BlockSpec((block_b, 1, H), lambda i: (i, 0, 0)),
            pl.BlockSpec((block_b, T), lambda i: (i, 0)),
        ),
        compiler_params=pltpu.CompilerParams(
            dimension_semantics=("parallel",)),   # megacore split on v7x
    )(enc, v)

    # Restore PyTorch return shapes: context [B,1,H], weights [B,T,1].
    return ctx, w[:, :, None]


# ----------------------------------------------------------------------------
def init_params(key, hidden_dim):
    H = hidden_dim
    k1, k2, k3, k4, k5 = jax.random.split(key, 5)
    n = lambda k, s: (0.1 * jax.random.normal(k, s)).astype(jnp.float32)
    return {
        # nn.Linear(2H, H): weight stored transposed ([2H, H]) and pre-split
        # into the half acting on encoder_outputs and the half acting on the
        # decoder hidden state (the latter is unused by the outputs).
        "w_att_enc": n(k1, (H, H)),
        "w_att_hid": n(k2, (H, H)),
        "b_att":     n(k3, (1, H)),
        # nn.Linear(H, 1)
        "w_align":   n(k4, (1, H)),
        "b_align":   n(k5, (1, 1)),
    }


if __name__ == "__main__":
    key = jax.random.PRNGKey(0)
    k_p, k_h, k_e = jax.random.split(key, 3)

    batch, seq_len, hidden_dim = 2, 8, 32
    params = init_params(k_p, hidden_dim)
    decoder_hidden = jax.random.normal(k_h, (batch, hidden_dim), jnp.float32)
    encoder_outputs = jax.random.normal(k_e, (batch, seq_len, hidden_dim),
                                        jnp.float32)

    context, attn_weights = attention_forward(params, decoder_hidden,
                                              encoder_outputs)
    jax.block_until_ready((context, attn_weights))

    assert context.shape == (batch, 1, hidden_dim)
    assert attn_weights.shape == (batch, seq_len, 1)

    # Pure-JAX reference of the ORIGINAL module math (concat form, all params).
    combined = jnp.concatenate(
        [encoder_outputs,
         jnp.broadcast_to(decoder_hidden[:, None, :], encoder_outputs.shape)],
        axis=-1)                                                   # [B, T, 2H]
    w_att_full = jnp.concatenate([params["w_att_enc"],
                                  params["w_att_hid"]], axis=0)    # [2H, H]
    energy = jnp.einsum("bts,sh->bth", combined, w_att_full,
                        precision=jax.lax.Precision.HIGHEST) + params["b_att"]
    scores = jnp.einsum("bth,oh->bto", energy, params["w_align"],
                        precision=jax.lax.Precision.HIGHEST) + params["b_align"]
    ref_w = jax.nn.softmax(scores, axis=1)                         # [B, T, 1]
    ref_ctx = jnp.einsum("bto,bth->boh", ref_w, encoder_outputs,
                         precision=jax.lax.Precision.HIGHEST)      # [B, 1, H]

    # bf16 enc stream + approx reciprocal -> compare at loose tolerance.
    assert jnp.allclose(context, ref_ctx, atol=2e-2, rtol=2e-2), (
        float(jnp.max(jnp.abs(context - ref_ctx))))
    assert jnp.allclose(attn_weights, ref_w, atol=2e-2, rtol=2e-2), (
        float(jnp.max(jnp.abs(attn_weights - ref_w))))

    print("KERNEL_OK")
</pallas_src>

<mosaic_0001>
module attributes {stable_mosaic.version = 11 : i64} {
  func.func @attention_kernel(%arg0: i32, %arg1: memref<2x8x32xbf16, #tpu.memory_space<vmem>>, %arg2: memref<1x1x32xf32, #tpu.memory_space<vmem>>, %arg3: memref<2x1x32xf32, #tpu.memory_space<vmem>>, %arg4: memref<2x8xf32, #tpu.memory_space<vmem>>) attributes {dimension_semantics = [#tpu.dimension_semantics<parallel>], iteration_bounds = array<i64: 1>, scalar_prefetch = 0 : i64, scratch_operands = 0 : i64, tpu.core_type = #tpu.core_type<tc>, window_params = [{transform_indices = @transform_0, window_bounds = array<i64: 2, 8, 32>}, {pipeline_mode = #tpu.pipeline_mode<synchronous>, transform_indices = @transform_1, window_bounds = array<i64: 1, 1, 32>}, {transform_indices = @transform_2, window_bounds = array<i64: 2, 1, 32>}, {transform_indices = @transform_3, window_bounds = array<i64: 2, 8>}]} {
    %c0 = arith.constant 0 : index
    %c0_0 = arith.constant 0 : index
    %c0_1 = arith.constant 0 : index
    %0 = vector.load %arg1[%c0, %c0_0, %c0_1] : memref<2x8x32xbf16, #tpu.memory_space<vmem>>, vector<2x8x32xbf16>
    %1 = arith.extf %0 : vector<2x8x32xbf16> to vector<2x8x32xf32>
    %c0_2 = arith.constant 0 : index
    %c0_3 = arith.constant 0 : index
    %c0_4 = arith.constant 0 : index
    %2 = vector.load %arg2[%c0_2, %c0_3, %c0_4] : memref<1x1x32xf32, #tpu.memory_space<vmem>>, vector<1x1x32xf32>
    %3 = vector.broadcast %2 : vector<1x1x32xf32> to vector<2x8x32xf32>
    %4 = arith.mulf %1, %3 : vector<2x8x32xf32>
    %cst = arith.constant dense<0.000000e+00> : vector<2x8xf32>
    %5 = vector.multi_reduction <add>, %4, %cst [2] : vector<2x8x32xf32> to vector<2x8xf32>
    %cst_5 = arith.constant dense<0xFF800000> : vector<2xf32>
    %6 = vector.multi_reduction <maximumf>, %5, %cst_5 [1] : vector<2x8xf32> to vector<2xf32>
    %7 = vector.shape_cast %6 : vector<2xf32> to vector<2x1xf32>
    %8 = vector.broadcast %7 : vector<2x1xf32> to vector<2x8xf32>
    %9 = arith.subf %5, %8 : vector<2x8xf32>
    %10 = math.exp %9 : vector<2x8xf32>
    %cst_6 = arith.constant dense<0.000000e+00> : vector<2xf32>
    %11 = vector.multi_reduction <add>, %10, %cst_6 [1] : vector<2x8xf32> to vector<2xf32>
    %12 = vector.shape_cast %11 : vector<2xf32> to vector<2x1xf32>
    %13 = tpu.reciprocal %12 {approx = true} : vector<2x1xf32> -> vector<2x1xf32>
    %14 = vector.broadcast %13 : vector<2x1xf32> to vector<2x8xf32>
    %15 = arith.mulf %10, %14 : vector<2x8xf32>
    %16 = vector.shape_cast %15 : vector<2x8xf32> to vector<2x1x8xf32>
    %17 = arith.truncf %16 : vector<2x1x8xf32> to vector<2x1x8xbf16>
    "tpu.trace_start"() <{level = 10 : i32, message = "bqt,bth->bqh"}> : () -> ()
    %cst_7 = arith.constant dense<0.000000e+00> : vector<2x1x32xf32>
    %18 = tpu.matmul %17, %0, %cst_7 {dimension_numbers = #tpu.dot_dimension_numbers<[2], [1], [1], [2], [0, 0, 0, 1, 1, 2], [0], [0]>} : vector<2x1x8xbf16>, vector<2x8x32xbf16>, vector<2x1x32xf32> -> vector<2x1x32xf32>
    "tpu.trace_stop"() : () -> ()
    %c0_8 = arith.constant 0 : index
    %c0_9 = arith.constant 0 : index
    %c0_10 = arith.constant 0 : index
    %19 = vector.load %arg3[%c0_8, %c0_9, %c0_10] : memref<2x1x32xf32, #tpu.memory_space<vmem>>, vector<2x1x32xf32>
    tpu.vector_store %arg3[%c0_8, %c0_9, %c0_10], %18 {strides = array<i32>} : memref<2x1x32xf32, #tpu.memory_space<vmem>>, vector<2x1x32xf32>,
    %c0_11 = arith.constant 0 : index
    %c0_12 = arith.constant 0 : index
    %20 = vector.load %arg4[%c0_11, %c0_12] : memref<2x8xf32, #tpu.memory_space<vmem>>, vector<2x8xf32>
    tpu.vector_store %arg4[%c0_11, %c0_12], %15 {strides = array<i32>} : memref<2x8xf32, #tpu.memory_space<vmem>>, vector<2x8xf32>,
    return
  }
  func.func @transform_0(%arg0: i32) -> (i32, i32, i32) {
    %c0_i32 = arith.constant 0 : i32
    %c0_i32_0 = arith.constant 0 : i32
    %c0_i32_1 = arith.constant 0 : i32
    return %arg0, %c0_i32, %c0_i32_0 : i32, i32, i32
  }
  func.func @transform_1(%arg0: i32) -> (i32, i32, i32) {
    %c0_i32 = arith.constant 0 : i32
    %c0_i32_0 = arith.constant 0 : i32
    %c0_i32_1 = arith.constant 0 : i32
    %c0_i32_2 = arith.constant 0 : i32
    return %c0_i32, %c0_i32_0, %c0_i32_1 : i32, i32, i32
  }
  func.func @transform_2(%arg0: i32) -> (i32, i32, i32) {
    %c0_i32 = arith.constant 0 : i32
    %c0_i32_0 = arith.constant 0 : i32
    %c0_i32_1 = arith.constant 0 : i32
    return %arg0, %c0_i32, %c0_i32_0 : i32, i32, i32
  }
  func.func @transform_3(%arg0: i32) -> (i32, i32) {
    %c0_i32 = arith.constant 0 : i32
    %c0_i32_0 = arith.constant 0 : i32
    return %arg0, %c0_i32 : i32, i32
  }
}

</mosaic_0001>

<bundles_post_ra>
// kernel: attention_forward.1
= control target key start
LH: loop header
LB: loop body
LE: loop exit
PB: predicated region body
PF: predicated region fallthrough
CT: control target
= control target key end

     0   :  { %9 = vsyncpa [#allocation3], 0  ;;  %s441_s0 = inlined_call_operand.vmem [shape: bf16[2,8,32], index: 0, kind: input, shape index: {}]   ;;  %s442_s1 = inlined_call_operand.vmem [shape: f32[1,1,32], index: 1, kind: input, shape index: {}]   ;;  %s443_s2 = inlined_call_operand.hbm [shape: f32[2,1,32], index: 2, kind: output, shape index: {0}]   ;;  %s444_s3 = inlined_call_operand.hbm [shape: f32[2,8], index: 3, kind: output, shape index: {1}]  }
   0x1   :  { %v387_v0 = vld [vmem:[%s441_s0] sm:$0xf]  ;;  %v396_v3 = vld [vmem:[%s441_s0 + $0x4] sm:$0xf] }
   0x2   :  { %v275_v1 = vld [vmem:[%s442_s1] ss:$0 sm:$0xff]  ;;  %v18_v2 = vunpack.c.l.bf16 %v387_v0 }
   0x3   :  { %10 = vsyncpa [#allocation5], 0  ;;  %vm29_vm0 = vcmask 261120   ;;  %v19_v4 = vunpack.c.l.bf16 %v396_v3  ;;  %v38_v9 = vlaneseq  ;;  %vm48_vm1 = vcmask 1041409   ;;  %s360_s0 = smov [#allocation4]  }
   0x4   :  { %v27_v5 = vmul.f32 %v275_v1, %v18_v2  ;;  %vm51_vm2 = vcmask 58368   ;;  %v357_v19 = vmov 0   ;;  %vm123_vm3 = vcmask 1043456   ;;  %s263_s1 = sshll.u32 %s360_s0, 4  ;;  %s264_s1 = int_to_ptr.vmem [resolvable:$true] %s263_s1 }
   0x5   :  { %v28_v6 = vmul.f32 %v275_v1, %v19_v4  ;;  %v39_v10 = vand.u32 127, %v38_v9  ;;  %v41_v11 = vshrl.u32 %v38_v9, 7  ;;  %302 = vset.pattern.permute.xlu0 %v357_v19  ;;  %301 = vset.pattern.permute.xlu1 %v357_v19  ;;  %v358_v46 = vmov 0.0   ;;  %s309_s18 = scalar_lea.vmem %s264_s1, 32  ;;  %p314_p1 = scmp.lt.s32.totalorder %s264_s1, %s264_s1 }
   0x6   :  { %v30_v7 = vsel %vm29_vm0, %v27_v5, 0.0  ;;  %282 = vmatprep.subr.bf16.mxu0 %v358_v46  ;;  %v125_v47 = vsel %vm123_vm3, %v387_v0, 0  ;;  %288 = vmatprep.subr.bf16.mxu1 %v358_v46  ;;  %vm359_vm4 = vmmov 0   ;;  %v181_v49 = vsel %vm123_vm3, %v396_v3, 0  ;;  %p310_p0 = scmp.ne.s32.totalorder %s264_s1, %s309_s18  ;;  %p315_p2 = scmp.lt.s32.totalorder %s309_s18, %s309_s18 }
   0x7   :  { %31 = vadd.xlane.f32.xlu0 %v30_v7  ;;  %v33_v8 = vsel %vm29_vm0, %v28_v6, 0.0  ;;  %v399_v13 = vsub.s32 %v39_v10, %v41_v11  ;;  %v58_v20 = vsub.s32 0, %v41_v11  ;;  %v62_v21 = vsub.s32 1, %v41_v11  ;;  %283 = vmatpush3.bf16.msra.mxu0 %v125_v47 }
   0x8   :  { %284 = vmatprep.mubr.msk.bf16.mxu0 %vm359_vm4, %v358_v46  ;;  %290 = vmatprep.mubr.msk.bf16.mxu1 %vm359_vm4, %v358_v46  ;;  %vm119_vm5 = vcmask 64512   ;;  %p316_p3 = por %p315_p2, %p314_p1 }
   0x9   :  { %289 = vmatpush3.bf16.msra.mxu1 %v181_v49 }
   0xa   :  { %p317_p4 = pnand %p316_p3, %p310_p0 }
   0xb   :  { %34 = vadd.xlane.f32.xlu0 %v33_v8 }
  0x94   :  { %v32_v12 = vpop.xlane.xlu0 %31 }
  0x95   :  { %v43_v15 = vrot.slane %v32_v12, %v399_v13 }
  0x98   :  { %v35_v14 = vpop.xlane.xlu0 %34 }
  0x99   :  { %v47_v16 = vrot.slane %v35_v14, %v399_v13 }
  0x9b   :  { %v49_v17 = vsel %vm48_vm1, %v47_v16, %v43_v15 }
  0x9c   :  { %v52_v18 = vsel %vm51_vm2, %v49_v17, -inf }
  0x9d   :  { %53 = vmax.xlane.f32.xlu1 %v52_v18 }
 0x12a   :  { %v54_v22 = vpop.xlane.xlu1 %53 }
 0x12b   :  { %v59_v23 = vrot.slane %v54_v22, %v58_v20  ;;  %v63_v24 = vrot.slane %v54_v22, %v62_v21 }
 0x12d   :  { %v66_v25 = vsub.f32 %v32_v12, %v59_v23  ;;  %v67_v26 = vsub.f32 %v35_v14, %v63_v24 }
 0x12f   :  { %v68_v27 = vmul.f32 1.442695, %v66_v25  ;;  %v70_v28 = vmul.f32 1.442695, %v67_v26 }
 0x131   :  { %303 = vpow2.f32 %v68_v27 }
 0x132   :  { %305 = vpow2.f32 %v70_v28 }
 0x13b   :  { %v304_v29 = vpop.eup %303 }
 0x13c   :  { %v306_v30 = vpop.eup %305  ;;  %75 = vperm.xlu1 %301, %v304_v29  }
 0x13d   :  { %78 = vperm.xlu0 %302, %v306_v30  }
 0x1bb   :  { %v76_v31 = vpop.permute.xlu1 %75 }
 0x1bc   :  { %v79_v32 = vpop.permute.xlu0 %78  ;;  %v83_v33 = vrot.slane %v76_v31, %v399_v13 }
 0x1bd   :  { %v87_v34 = vrot.slane %v79_v32, %v399_v13 }
 0x1bf   :  { %v88_v35 = vsel %vm48_vm1, %v87_v34, %v83_v33 }
 0x1c0   :  { %v90_v36 = vsel %vm51_vm2, %v88_v35, 0.0 }
 0x1c1   :  { %91 = vadd.xlane.f32.xlu1 %v90_v36 }
 0x24e   :  { %v92_v37 = vpop.xlane.xlu1 %91 }
 0x24f   :  { %307 = vrcp.f32 %v92_v37 }
 0x259   :  { %v308_v38 = vpop.eup %307 }
 0x25a   :  { %v98_v39 = vrot.slane %v308_v38, %v58_v20  ;;  %v102_v40 = vrot.slane %v308_v38, %v62_v21 }
 0x25c   :  { %v105_v41 = vmul.f32 %v304_v29, %v98_v39  ;;  %v106_v42 = vmul.f32 %v306_v30, %v102_v40 }
 0x25e   :  { %229 = vperm.xlu1 %301, %v105_v41   ;;  %v107_v43 = vpack.c.bf16 %v105_v41, %v105_v41  ;;  %v108_v45 = vpack.c.bf16 %v106_v42, %v106_v42 }
 0x260   :  { %v110_v44 = vunpack.c.l.b16 %v107_v43  ;;  %v168_v48 = vunpack.c.l.b16 %v108_v45 }
 0x262   :  { %112 = vperm.xlu0 %302, %v110_v44  }
 0x266   :  { %170 = vperm.xlu0 %302, %v168_v48  }
 0x26a   :  { %232 = vperm.xlu0 %302, %v106_v42  }
 0x2dd   :  { %v230_v55 = vpop.permute.xlu1 %229 }
 0x2de   :  { %v237_v58 = vrot.slane %v230_v55, %v399_v13 }
 0x2e1   :  { %v113_v50 = vpop.permute.xlu0 %112 }
 0x2e2   :  { %v117_v51 = vrot.slane %v113_v50, %v399_v13 }
 0x2e4   :  { %v118_v52 = vpack.c.b16 %v117_v51, %v117_v51 }
 0x2e5   :  { %v171_v53 = vpop.permute.xlu0 %170 }
 0x2e6   :  { %v175_v54 = vrot.slane %v171_v53, %v399_v13  ;;  %285 = vmatmul.mubr.msk.bf16.vlgmr.msra.gmra.mrb[0].mxu0 %vm119_vm5, %v118_v52 }
 0x2e8   :  { %v176_v56 = vpack.c.b16 %v175_v54, %v175_v54 }
 0x2e9   :  { %v233_v57 = vpop.permute.xlu0 %232 }
 0x2ea   :  { %v241_v59 = vrot.slane %v233_v57, %v399_v13  ;;  %291 = vmatmul.mubr.msk.bf16.vlgmr.msra.gmra.mrb[0].mxu1 %vm119_vm5, %v176_v56 }
 0x2ec   :  { %v242_v60 = vsel %vm48_vm1, %v241_v59, %v237_v58 }
 0x2ed   :  { %244 = vst.msk [vmem:[#allocation4] sm:$0x3] %vm51_vm2, %v242_v60 }
 0x2ee   :  { %320 = shalt.err (!%p317_p4)
}
 0x2ef   :  { %s321_s21 = scalar_lea.hbm %s444_s3, 32 }
 0x2f0   :  { %p322_p5 = scmp.ne.s32.totalorder %s444_s3, %s321_s21  ;;  %p325_p6 = scmp.lt.u32.totalorder %s321_s21, %s444_s3 }
 0x2f2   :  { %p327_p7 = pnand %p325_p6, %p322_p5 }
 0x2f4   :  { %330 = shalt.err (!%p327_p7)
}
 0x2f5   :  { %266 = dma.vmem_to_hbm [thread:$0]  %s264_s1, 32, %s444_s3, [#allocation5]   ;;  %vm223_vm6 = vcmask 253952  }
 0x2f6   :  { %s361_s28 = smov [#allocation2]  }
 0x2f7   :  { %s250_s29 = sshll.u32 %s361_s28, 4  ;;  %s251_s29 = int_to_ptr.vmem [resolvable:$true] %s250_s29 }
 0x2f8   :  { %s331_s30 = scalar_lea.vmem %s251_s29, 32  ;;  %p336_p9 = scmp.lt.s32.totalorder %s251_s29, %s251_s29 }
 0x2f9   :  { %p332_p8 = scmp.ne.s32.totalorder %s251_s29, %s331_s30  ;;  %p337_p10 = scmp.lt.s32.totalorder %s331_s30, %s331_s30 }
 0x2fb   :  { %p338_p11 = por %p337_p10, %p336_p9 }
 0x2fd   :  { %p339_p12 = pnand %p338_p11, %p332_p8 }
 0x3b9   :  { %v161_v61 = vpop.f32.mrb[0].mxu0 }
 0x3ba   :  { %224 = vst.msk [vmem:[#allocation2] sm:$0x1] %vm223_vm6, %v161_v61  ;;  %v286_v62 = vpop.f32.mrb[1].mxu0 }
 0x3bb   :  { %v164_v63 = vpop.f32.mrb[2].mxu0 }
 0x3bc   :  { %v287_v0 = vpop.f32.mrb[3].mxu0 }
 0x3bd   :  { %v217_v1 = vpop.f32.mrb[0].mxu1 }
 0x3be   :  { %225 = vst.msk [vmem:[#allocation2 + $0x1] sm:$0x1] %vm223_vm6, %v217_v1  ;;  %v292_v2 = vpop.f32.mrb[1].mxu1 }
 0x3bf   :  { %v220_v3 = vpop.f32.mrb[2].mxu1 }
 0x3c0   :  { %342 = shalt.err (!%p339_p12)
}
 0x3c1   :  { %s343_s5 = scalar_lea.hbm %s443_s2, 32 }
 0x3c2   :  { %p344_p13 = scmp.ne.s32.totalorder %s443_s2, %s343_s5  ;;  %p347_p0 = scmp.lt.u32.totalorder %s343_s5, %s443_s2 }
 0x3c4   :  { %p349_p1 = pnand %p347_p0, %p344_p13 }
 0x3c6   :  { %352 = shalt.err (!%p349_p1)
}
 0x3c7   :  { %s362_s10 = smov 16   ;;  %s363_s11 = smov 1   ;;  %v293_v4 = vpop.f32.mrb[3].mxu1 }
 0x3c8   :  { %256 = dma.vmem_to_hbm [thread:$0]  %s251_s29, 32, %s443_s2, [#allocation3], %s362_s10, %s362_s10, %s363_s11  }
 0x3c9   :  { %353 = dma.done.wait [#allocation3], 32  }
 0x3ca   :  { %354 = vsyncadd [#allocation3], 4294967264 }
 0x3cb   :  { %355 = dma.done.wait [#allocation5], 32  }
 0x3cc   :  { %356 = vsyncadd [#allocation5], 4294967264 }
 0x3cd   :  { %273 = vsyncpa [#allocation3], 1 }
 0x3ce   :  { %274 = vsyncpa [#allocation5], 1 }

</bundles_post_ra>
